<compile_context>
chip_gen: v5e
topology: v5e:2x2
jax: 0.10.0
libtpu: 0.0.40
codegen_flags: <defaults>
</compile_context>

<pallas_src>
import functools

import jax
import jax.numpy as jnp
from jax.experimental import pallas as pl
from jax.experimental.pallas import tpu as pltpu

LANE = 128      # vreg lane width
SUBLANE = 8     # vreg sublane count (f32)


def _cdiv(a, b):
    return -(-a // b)


def _round_up(n, m):
    return _cdiv(n, m) * m


def _default_lane_target():
    """256-lane block-diag fills the 256x256 MXU on v6e/v7x; 128 on v5e/older."""
    try:
        kind = jax.devices()[0].device_kind.lower()
    except Exception:
        return LANE
    if "v6" in kind or "v7" in kind:
        return 2 * LANE
    return LANE


def pack_params(w1, b1, w2, b2, lane_target=None):
    """One-time host-side packing into a single lane-dense (2*dp+16, dp) slab.

    If DIM divides lane_target: block-diagonal replication r = lane_target/DIM,
    so activations reshape to (B/r, r*DIM) with no zero padding at all.
    Otherwise: r = 1 and DIM is zero-padded up to a multiple of 128 lanes.

    Slab rows:
        [0,       dp)       W1 block-diag (in -> out layout)
        [dp,      dp+8)     b1 tiled r times, in row 0
        [dp+8,    2dp+8)    W2 block-diag
        [2dp+8,   2dp+16)   b2 tiled r times, in row 0
    """
    dim = w1.shape[0]
    if lane_target is None:
        lane_target = _default_lane_target()

    if dim < lane_target and lane_target % dim == 0:
        r, dp = lane_target // dim, lane_target          # dense block-diag path
    elif dim % LANE == 0:
        r, dp = 1, dim                                   # already lane-dense
    else:
        r, dp = 1, _round_up(dim, LANE)                  # zero-pad fallback

    def pack_w(w):
        wt = jnp.asarray(w, jnp.float32).T               # (in, out)
        blk = jnp.zeros((dp, dp), jnp.float32)
        for j in range(r):
            blk = blk.at[j * dim:(j + 1) * dim, j * dim:(j + 1) * dim].set(wt)
        return blk

    def pack_b(bias):
        blk = jnp.zeros((SUBLANE, dp), jnp.float32)
        return blk.at[0, :r * dim].set(jnp.tile(jnp.asarray(bias, jnp.float32), r))

    slab = jnp.concatenate([pack_w(w1), pack_b(b1), pack_w(w2), pack_b(b2)], axis=0)
    return slab, dim, dp, r


def _mini_model_kernel(x_ref, p_ref, o_ref):
    # x_ref: (rows, dp) activation tile; p_ref: (2*dp+16, dp) parameter slab.
    dp = x_ref.shape[-1]
    x = x_ref[...]
    w1 = p_ref[0:dp, :]                                        # static views
    b1 = p_ref[dp:dp + 1, :]                                   # (1, dp) broadcast
    w2 = p_ref[dp + SUBLANE:2 * dp + SUBLANE, :]
    b2 = p_ref[2 * dp + SUBLANE:2 * dp + SUBLANE + 1, :]

    h = jnp.dot(x, w1, preferred_element_type=jnp.float32) + b1   # fc1 + bias
    h = jnp.maximum(h, 0.0)                                       # relu
    y = jnp.dot(h, w2, preferred_element_type=jnp.float32) + b2   # fc2 + bias
    o_ref[...] = y.astype(o_ref.dtype)


def mini_model_forward(x, slab, dim, dp, r, *, block_rows=1024):
    """x: (B, DIM) f32. Returns (B, DIM) f32, identical math to fc2(relu(fc1(x)))."""
    b = x.shape[0]
    n_slab_rows = slab.shape[0]
    rows = _cdiv(b, r)                       # kernel rows (r batch rows per kernel row)

    if rows <= block_rows:
        n_blocks, block = 1, rows
        grid_rows = rows
    else:
        # >= 2 grid steps so the "parallel" axis can split across v7x TensorCores,
        # blocks sized from the actual row count to minimize round-up waste.
        n_blocks = max(2, _cdiv(rows, block_rows))
        block = _round_up(_cdiv(rows, n_blocks), SUBLANE)
        grid_rows = n_blocks * block

    xf = x.astype(jnp.float32)
    if r > 1:
        bp = grid_rows * r
        if bp != b:
            xf = jnp.pad(xf, ((0, bp - b), (0, 0)))
        xp = xf.reshape(grid_rows, dp)       # free row-major view, fully lane-dense
    else:
        if grid_rows != b or dp != dim:
            xp = jnp.pad(xf, ((0, grid_rows - b), (0, dp - dim)))
        else:
            xp = xf

    if n_blocks == 1:
        # Tiny path: single invocation, no grid, whole arrays resident in VMEM.
        out = pl.pallas_call(
            _mini_model_kernel,
            out_shape=jax.ShapeDtypeStruct((grid_rows, dp), jnp.float32),
            in_specs=[
                pl.BlockSpec(memory_space=pltpu.MemorySpace.VMEM),
                pl.BlockSpec(memory_space=pltpu.MemorySpace.VMEM),
            ],
            out_specs=pl.BlockSpec(memory_space=pltpu.MemorySpace.VMEM),
        )(xp, slab)
    else:
        # Batched path: stream activations over a parallel batch grid; the
        # parameter slab stays VMEM-resident (constant index_map).
        out = pl.pallas_call(
            _mini_model_kernel,
            out_shape=jax.ShapeDtypeStruct((grid_rows, dp), jnp.float32),
            grid_spec=pltpu.PrefetchScalarGridSpec(
                num_scalar_prefetch=0,
                grid=(n_blocks,),
                in_specs=[
                    pl.BlockSpec((block, dp), lambda i: (i, 0)),
                    pl.BlockSpec((n_slab_rows, dp), lambda i: (0, 0)),
                ],
                out_specs=pl.BlockSpec((block, dp), lambda i: (i, 0)),
            ),
            compiler_params=pltpu.CompilerParams(
                dimension_semantics=("parallel",),
                vmem_limit_bytes=64 * 1024 * 1024,
            ),
        )(xp, slab)

    if r > 1:
        out = out.reshape(grid_rows * r, dim)
        return out if grid_rows * r == b else out[:b]
    return out if (grid_rows == b and dp == dim) else out[:b, :dim]


def make_mini_model(w1, b1, w2, b2, *, block_rows=1024, lane_target=None):
    """Pack parameters once, return a jitted forward fn (weights are constants)."""
    slab, dim, dp, r = pack_params(w1, b1, w2, b2, lane_target)
    fwd = functools.partial(mini_model_forward, slab=slab, dim=dim, dp=dp, r=r,
                            block_rows=block_rows)
    return jax.jit(fwd)


if __name__ == "__main__":
    DIM = 32
    B = 8

    key = jax.random.PRNGKey(0)
    kx, kw1, kb1, kw2, kb2 = jax.random.split(key, 5)

    # Deterministic PyTorch-like Linear init: U(-1/sqrt(DIM), 1/sqrt(DIM)).
    bound = 1.0 / (DIM ** 0.5)
    x = jax.random.normal(kx, (B, DIM), dtype=jnp.float32)
    w1 = jax.random.uniform(kw1, (DIM, DIM), jnp.float32, -bound, bound)  # (out, in)
    b1 = jax.random.uniform(kb1, (DIM,), jnp.float32, -bound, bound)
    w2 = jax.random.uniform(kw2, (DIM, DIM), jnp.float32, -bound, bound)  # (out, in)
    b2 = jax.random.uniform(kb2, (DIM,), jnp.float32, -bound, bound)

    # Small batch (tiny no-grid path; B=8, DIM=32 packs into a single dense tile).
    fwd = make_mini_model(w1, b1, w2, b2)
    out = jax.block_until_ready(fwd(x))
    ref = jnp.maximum(x @ w1.T + b1, 0.0) @ w2.T + b2
    assert out.shape == (B, DIM)
    assert jnp.allclose(out, ref, atol=1e-4, rtol=1e-4), "mismatch vs reference (small)"

    # Larger batch: small block_rows to exercise the gridded, batch-parallel,
    # weights-resident path (production default block_rows=1024).
    fwd_grid = make_mini_model(w1, b1, w2, b2, block_rows=16)
    xb = jax.random.normal(jax.random.PRNGKey(1), (1000, DIM), dtype=jnp.float32)
    outb = jax.block_until_ready(fwd_grid(xb))
    refb = jnp.maximum(xb @ w1.T + b1, 0.0) @ w2.T + b2
    assert outb.shape == (1000, DIM)
    assert jnp.allclose(outb, refb, atol=1e-4, rtol=1e-4), "mismatch vs reference (batched)"

    print("KERNEL_OK")
</pallas_src>

<mosaic_0001>
module attributes {stable_mosaic.version = 11 : i64} {
  func.func @_mini_model_kernel(%arg0: memref<2x128xf32, #tpu.memory_space<vmem>>, %arg1: memref<272x128xf32, #tpu.memory_space<vmem>>, %arg2: memref<2x128xf32, #tpu.memory_space<vmem>>) attributes {dimension_semantics = [], scalar_prefetch = 0 : i64, scratch_operands = 0 : i64, tpu.core_type = #tpu.core_type<tc>} {
    %c0 = arith.constant 0 : index
    %c0_0 = arith.constant 0 : index
    %0 = vector.load %arg0[%c0, %c0_0] : memref<2x128xf32, #tpu.memory_space<vmem>>, vector<2x128xf32>
    %c0_1 = arith.constant 0 : index
    %c0_2 = arith.constant 0 : index
    %1 = vector.load %arg1[%c0_1, %c0_2] : memref<272x128xf32, #tpu.memory_space<vmem>>, vector<128x128xf32>
    %c128 = arith.constant 128 : index
    %c0_3 = arith.constant 0 : index
    %2 = vector.load %arg1[%c128, %c0_3] : memref<272x128xf32, #tpu.memory_space<vmem>>, vector<1x128xf32>
    %c136 = arith.constant 136 : index
    %c0_4 = arith.constant 0 : index
    %3 = vector.load %arg1[%c136, %c0_4] : memref<272x128xf32, #tpu.memory_space<vmem>>, vector<128x128xf32>
    %c264 = arith.constant 264 : index
    %c0_5 = arith.constant 0 : index
    %4 = vector.load %arg1[%c264, %c0_5] : memref<272x128xf32, #tpu.memory_space<vmem>>, vector<1x128xf32>
    %cst = arith.constant dense<0.000000e+00> : vector<2x128xf32>
    %5 = tpu.matmul %0, %1, %cst {dimension_numbers = #tpu.dot_dimension_numbers<[1], [0], [0], [1], [0, 0, 1, 1], [], []>} : vector<2x128xf32>, vector<128x128xf32>, vector<2x128xf32> -> vector<2x128xf32>
    %6 = vector.broadcast %2 : vector<1x128xf32> to vector<2x128xf32>
    %7 = arith.addf %5, %6 : vector<2x128xf32>
    %cst_6 = arith.constant 0.000000e+00 : f32
    %8 = vector.broadcast %cst_6 : f32 to vector<2x128xf32>
    %9 = arith.maximumf %7, %8 : vector<2x128xf32>
    %cst_7 = arith.constant dense<0.000000e+00> : vector<2x128xf32>
    %10 = tpu.matmul %9, %3, %cst_7 {dimension_numbers = #tpu.dot_dimension_numbers<[1], [0], [0], [1], [0, 0, 1, 1], [], []>} : vector<2x128xf32>, vector<128x128xf32>, vector<2x128xf32> -> vector<2x128xf32>
    %11 = vector.broadcast %4 : vector<1x128xf32> to vector<2x128xf32>
    %12 = arith.addf %10, %11 : vector<2x128xf32>
    %c0_8 = arith.constant 0 : index
    %c0_9 = arith.constant 0 : index
    %13 = vector.load %arg2[%c0_8, %c0_9] : memref<2x128xf32, #tpu.memory_space<vmem>>, vector<2x128xf32>
    tpu.vector_store %arg2[%c0_8, %c0_9], %12 {strides = array<i32>} : memref<2x128xf32, #tpu.memory_space<vmem>>, vector<2x128xf32>,
    return
  }
}

</mosaic_0001>

<bundles_post_ra>
// kernel: mini_model_forward.1
= control target key start
LH: loop header
LB: loop body
LE: loop exit
PB: predicated region body
PF: predicated region fallthrough
CT: control target
= control target key end

     0   :  { %7 = vsyncpa [#allocation3], 0  ;;  %s142_s12 = smov [#allocation2]   ;;  %s143_s14 = smov 128   ;;  %s169_s0 = inlined_call_operand.vmem [shape: f32[2,128], index: 0, kind: input, shape index: {}]   ;;  %s170_s1 = inlined_call_operand.hbm [shape: f32[272,128], index: 1, kind: input, shape index: {}]   ;;  %s171_s2 = inlined_call_operand.vmem [shape: f32[2,128], index: 2, kind: output, shape index: {}]  }
   0x1   :  { %s14_s11 = sshll.u32 %s170_s1, 4  ;;  %s16_s13 = sshll.u32 %s142_s12, 4  ;;  %s15_s11 = int_to_ptr.hbm [resolvable:$true] %s14_s11  ;;  %s17_s13 = int_to_ptr.vmem [resolvable:$true] %s16_s13 }
   0x2   :  { %s144_s15 = smov 8  }
   0x3   :  { %22 = dma.hbm_to_vmem [thread:$0]  %s15_s11, 4352, %s17_s13, [#allocation3], %s143_s14, %s143_s14, %s144_s15  }
   0x4   :  { %140 = dma.done.wait [#allocation3], 4352  }
   0x5   :  { %141 = vsyncadd [#allocation3], 4294962944  ;;  %v43_v0 = vld [vmem:[#allocation2 + $0x78] sm:$0xff]  ;;  %v42_v1 = vld [vmem:[#allocation2 + $0x70] sm:$0xff] }
   0x6   :  { %63 = vmatpush.msra.mxu0 %v43_v0  ;;  %v41_v2 = vld [vmem:[#allocation2 + $0x68] sm:$0xff]  ;;  %v40_v3 = vld [vmem:[#allocation2 + $0x60] sm:$0xff]  ;;  %v39_v5 = vld [vmem:[#allocation2 + $0x58] sm:$0xff] }
   0x7   :  { %v60_v4 = vld [vmem:[#allocation2 + $0x100] sm:$0xff]  ;;  %v59_v6 = vld [vmem:[#allocation2 + $0xf8] sm:$0xff]  ;;  %v58_v7 = vld [vmem:[#allocation2 + $0xf0] sm:$0xff] }
   0x8   :  { %64 = vmatpush.msra.mxu0 %v42_v1  ;;  %85 = vmatpush.msra.mxu1 %v60_v4  ;;  %v38_v8 = vld [vmem:[#allocation2 + $0x50] sm:$0xff]  ;;  %v57_v9 = vld [vmem:[#allocation2 + $0xe8] sm:$0xff]  ;;  %v56_v11 = vld [vmem:[#allocation2 + $0xe0] sm:$0xff] }
   0x9   :  { %v37_v10 = vld [vmem:[#allocation2 + $0x48] sm:$0xff]  ;;  %v36_v12 = vld [vmem:[#allocation2 + $0x40] sm:$0xff]  ;;  %v55_v13 = vld [vmem:[#allocation2 + $0xd8] sm:$0xff] }
   0xa   :  { %65 = vmatpush.msra.mxu0 %v41_v2  ;;  %86 = vmatpush.msra.mxu1 %v59_v6  ;;  %v35_v14 = vld [vmem:[#allocation2 + $0x38] sm:$0xff]  ;;  %v54_v15 = vld [vmem:[#allocation2 + $0xd0] sm:$0xff]  ;;  %v53_v17 = vld [vmem:[#allocation2 + $0xc8] sm:$0xff] }
   0xb   :  { %v34_v16 = vld [vmem:[#allocation2 + $0x30] sm:$0xff]  ;;  %v33_v18 = vld [vmem:[#allocation2 + $0x28] sm:$0xff]  ;;  %v52_v19 = vld [vmem:[#allocation2 + $0xc0] sm:$0xff] }
   0xc   :  { %66 = vmatpush.msra.mxu0 %v40_v3  ;;  %87 = vmatpush.msra.mxu1 %v58_v7  ;;  %v32_v20 = vld [vmem:[#allocation2 + $0x20] sm:$0xff]  ;;  %v51_v21 = vld [vmem:[#allocation2 + $0xb8] sm:$0xff]  ;;  %v50_v23 = vld [vmem:[#allocation2 + $0xb0] sm:$0xff] }
   0xd   :  { %v31_v22 = vld [vmem:[#allocation2 + $0x18] sm:$0xff]  ;;  %v30_v24 = vld [vmem:[#allocation2 + $0x10] sm:$0xff]  ;;  %v49_v25 = vld [vmem:[#allocation2 + $0xa8] sm:$0xff] }
   0xe   :  { %67 = vmatpush.msra.mxu0 %v39_v5  ;;  %88 = vmatpush.msra.mxu1 %v57_v9  ;;  %v29_v26 = vld [vmem:[#allocation2 + $0x8] sm:$0xff]  ;;  %v48_v27 = vld [vmem:[#allocation2 + $0xa0] sm:$0xff]  ;;  %v47_v30 = vld [vmem:[#allocation2 + $0x98] sm:$0xff] }
   0xf   :  { %v28_v28 = vld [vmem:[#allocation2] sm:$0xff]  ;;  %v46_v31 = vld [vmem:[#allocation2 + $0x90] sm:$0xff]  ;;  %v45_v32 = vld [vmem:[#allocation2 + $0x88] sm:$0xff] }
  0x10   :  { %68 = vmatpush.msra.mxu0 %v38_v8  ;;  %89 = vmatpush.msra.mxu1 %v56_v11  ;;  %v27_v29 = vld [vmem:[%s169_s0] sm:$0x3]  ;;  %v115_v37 = vld [vmem:[#allocation2 + $0x108] ss:$0 sm:$0xff] }
  0x11   :  { %v114_v33 = vld [vmem:[#allocation2 + $0x80] ss:$0 sm:$0xff] }
  0x12   :  { %69 = vmatpush.msra.mxu0 %v37_v10  ;;  %90 = vmatpush.msra.mxu1 %v55_v13 }
  0x14   :  { %70 = vmatpush.msra.mxu0 %v36_v12  ;;  %91 = vmatpush.msra.mxu1 %v54_v15 }
  0x16   :  { %71 = vmatpush.msra.mxu0 %v35_v14  ;;  %92 = vmatpush.msra.mxu1 %v53_v17 }
  0x18   :  { %72 = vmatpush.msra.mxu0 %v34_v16  ;;  %93 = vmatpush.msra.mxu1 %v52_v19 }
  0x1a   :  { %73 = vmatpush.msra.mxu0 %v33_v18  ;;  %94 = vmatpush.msra.mxu1 %v51_v21 }
  0x1c   :  { %74 = vmatpush.msra.mxu0 %v32_v20  ;;  %95 = vmatpush.msra.mxu1 %v50_v23 }
  0x1e   :  { %75 = vmatpush.msra.mxu0 %v31_v22  ;;  %96 = vmatpush.msra.mxu1 %v49_v25 }
  0x20   :  { %76 = vmatpush.msra.mxu0 %v30_v24  ;;  %97 = vmatpush.msra.mxu1 %v48_v27 }
  0x22   :  { %77 = vmatpush.msra.mxu0 %v29_v26  ;;  %98 = vmatpush.msra.mxu1 %v47_v30 }
  0x24   :  { %78 = vmatpush.msra.mxu0 %v28_v28  ;;  %99 = vmatpush.msra.mxu1 %v46_v31 }
  0x25   :  { %79 = vmatmul.f32.vlgmr.msra.gmra.mxu0 %v27_v29 }
  0x26   :  { %100 = vmatpush.msra.mxu1 %v45_v32 }
  0xa2   :  { %v80_v34 = vpop.f32.mrf.mxu0 }
  0xa3   :  { %v81_v35 = vadd.f32 %v114_v33, %v80_v34 }
  0xa5   :  { %v83_v36 = vmax.f32 %v81_v35, 0.0 }
  0xa7   :  { %101 = vmatmul.f32.vlgmr.msra.gmra.mxu1 %v83_v36 }
 0x124   :  { %v102_v38 = vpop.f32.mrf.mxu1 }
 0x125   :  { %v103_v39 = vadd.f32 %v115_v37, %v102_v38 }
 0x127   :  { %105 = vst [vmem:[%s171_s2] sm:$0x3] %v103_v39 }
 0x128   :  { %110 = vsyncpa [#allocation3], 1 }

</bundles_post_ra>
